<compile_context>
chip_gen: v5e
topology: v5e:2x2
jax: 0.10.0
libtpu: 0.0.40
codegen_flags: <defaults>
</compile_context>

<pallas_src>
import jax
import jax.numpy as jnp
from jax.experimental import pallas as pl
from jax.experimental.pallas import tpu as pltpu


def _head_kernel(x_ref, dw_ref, db_ref, ow_ref, ob_ref, out_ref, acc_ref):
    """One (branch, k) grid step.

    x_ref   : [B_pad, tk]  f32   activation K-slice
    dw_ref  : [tk, H]      bf16  dense-weight slab (K-slice)
    db_ref  : [1, H]       f32   dense bias
    ow_ref  : [H, Lp]      bf16  out_proj weight (lane-padded to Lp)
    ob_ref  : [1, Lp]      f32   out_proj bias (lane-padded)
    out_ref : [B_pad, Lp]  f32   logits (lane-padded)
    acc_ref : [B_pad, H]   f32   VMEM accumulator for the dense matmul
    """
    k = pl.program_id(1)

    @pl.when(k == 0)
    def _init():
        acc_ref[...] = jnp.zeros_like(acc_ref)

    # Dense matmul: bf16 operands on the MXU, f32 accumulation.
    acc_ref[...] += jnp.dot(
        x_ref[...].astype(jnp.bfloat16), dw_ref[...],
        preferred_element_type=jnp.float32)

    @pl.when(k == pl.num_programs(1) - 1)
    def _finalize():
        h = jnp.tanh(acc_ref[...] + db_ref[...])                 # f32 epilogue
        y = jnp.dot(h.astype(jnp.bfloat16), ow_ref[...],
                    preferred_element_type=jnp.float32) + ob_ref[...]
        out_ref[...] = y.astype(out_ref.dtype)


def _round_up(x, m):
    return ((x + m - 1) // m) * m


def _choose_tk(hidden, max_tk=512):
    """Largest multiple of 128 <= max_tk that divides hidden; else the full hidden dim."""
    tk = max_tk
    while tk >= 128:
        if tk <= hidden and hidden % tk == 0:
            return tk
        tk -= 128
    return hidden


def prepare_params(params, num_labels):
    """Stack both branches' weights, pad out_proj to 128 lanes, cast weights to bf16.

    Done once per model, not per forward call.
    """
    Lp = _round_up(max(num_labels, 1), 128)

    def pad_last(a):
        return jnp.pad(a, ((0, 0), (0, Lp - a.shape[-1])))

    return {
        "dw": jnp.stack([params["cls_dw"], params["dis_dw"]]).astype(jnp.bfloat16),  # [2,H,H]
        "db": jnp.stack([params["cls_db"], params["dis_db"]]).astype(jnp.float32),   # [2,1,H]
        "ow": jnp.stack([pad_last(params["cls_ow"]),
                         pad_last(params["dis_ow"])]).astype(jnp.bfloat16),          # [2,H,Lp]
        "ob": jnp.stack([pad_last(params["cls_ob"]),
                         pad_last(params["dis_ob"])]).astype(jnp.float32),           # [2,1,Lp]
        "num_labels": num_labels,
    }


def roberta_classification_head(features, dis_locations, prepared):
    """features: [B, S, H] f32; dis_locations: [B] int32; prepared: see prepare_params."""
    B, _, H = features.shape
    L = prepared["num_labels"]
    Lp = prepared["ow"].shape[-1]
    B_pad = _round_up(B, 8)
    tk = _choose_tk(H)
    nk = H // tk

    # Token gathers: features[:, 0, :] and features[i, dis_locations[i], :].
    # TODO(synk): could move the gather in-kernel via PrefetchScalarGridSpec + pl.Element
    # on the sequence dim, but that forces a per-example (1, H) MXU tile; kept in the wrapper.
    x_cls = features[:, 0, :]
    x_dis = jnp.take_along_axis(
        features, dis_locations[:, None, None].astype(jnp.int32), axis=1)[:, 0, :]
    x = jnp.stack([x_cls, x_dis], axis=0)                                   # [2, B, H]
    if B_pad != B:
        x = jnp.pad(x, ((0, 0), (0, B_pad - B), (0, 0)))

    # TODO(synk): nn.Dropout treated as identity (eval-mode semantics).

    sq = pl.Squeezed()

    cost = pl.CostEstimate(
        flops=2 * (2 * B_pad * H * H + 2 * B_pad * H * Lp),
        transcendentals=2 * B_pad * H,
        bytes_accessed=(2 * B_pad * H * 4          # activations in
                        + 2 * H * H * 2            # dense weights (bf16)
                        + 2 * H * 4                # dense biases
                        + 2 * H * Lp * 2           # out_proj weights (bf16)
                        + 2 * Lp * 4               # out_proj biases
                        + 2 * B_pad * Lp * 4),     # logits out
    )

    # VMEM budget: double-buffered blocks + f32 accumulator, generous headroom.
    vmem_bytes = (2 * B_pad * tk * 4 + 2 * tk * H * 2 + 2 * H * 4
                  + 2 * H * Lp * 2 + 2 * Lp * 4 + 2 * B_pad * Lp * 4
                  + B_pad * H * 4)
    vmem_limit = min(64 * 1024 * 1024, max(16 * 1024 * 1024, 2 * vmem_bytes))

    out = pl.pallas_call(
        _head_kernel,
        out_shape=jax.ShapeDtypeStruct((2, B_pad, Lp), jnp.float32),
        grid_spec=pltpu.PrefetchScalarGridSpec(
            num_scalar_prefetch=0,
            grid=(2, nk),
            in_specs=[
                pl.BlockSpec((sq, B_pad, tk), lambda b, k: (b, 0, k)),   # x
                pl.BlockSpec((sq, tk, H),     lambda b, k: (b, k, 0)),   # dense weight
                pl.BlockSpec((sq, 1, H),      lambda b, k: (b, 0, 0)),   # dense bias
                pl.BlockSpec((sq, H, Lp),     lambda b, k: (b, 0, 0)),   # out_proj weight
                pl.BlockSpec((sq, 1, Lp),     lambda b, k: (b, 0, 0)),   # out_proj bias
            ],
            out_specs=pl.BlockSpec((sq, B_pad, Lp), lambda b, k: (b, 0, 0)),
            scratch_shapes=[pltpu.VMEM((B_pad, H), jnp.float32)],
        ),
        compiler_params=pltpu.CompilerParams(
            dimension_semantics=("parallel", "arbitrary"),   # branch axis -> v7x megacore
            vmem_limit_bytes=vmem_limit,
        ),
        cost_estimate=cost,
    )(x, prepared["dw"], prepared["db"], prepared["ow"], prepared["ob"])

    return out[0, :B, :L], out[1, :B, :L]


def init_params(key, hidden_size, num_labels):
    """Deterministic synthetic init. Weights stored as [in, out] (PyTorch W.T)."""
    ks = jax.random.split(key, 8)
    scale = 0.02
    return {
        "cls_dw": scale * jax.random.normal(ks[0], (hidden_size, hidden_size), jnp.float32),
        "cls_db": scale * jax.random.normal(ks[1], (1, hidden_size), jnp.float32),
        "cls_ow": scale * jax.random.normal(ks[2], (hidden_size, num_labels), jnp.float32),
        "cls_ob": scale * jax.random.normal(ks[3], (1, num_labels), jnp.float32),
        "dis_dw": scale * jax.random.normal(ks[4], (hidden_size, hidden_size), jnp.float32),
        "dis_db": scale * jax.random.normal(ks[5], (1, hidden_size), jnp.float32),
        "dis_ow": scale * jax.random.normal(ks[6], (hidden_size, num_labels), jnp.float32),
        "dis_ob": scale * jax.random.normal(ks[7], (1, num_labels), jnp.float32),
    }


def _reference_f32(features, dis_locations, params):
    """Pure-f32 JAX reference (original PyTorch math)."""
    x_cls = features[:, 0, :]
    x_cls = jnp.tanh(x_cls @ params["cls_dw"] + params["cls_db"])
    x_cls = x_cls @ params["cls_ow"] + params["cls_ob"]
    x_dis = features[jnp.arange(features.shape[0]), dis_locations, :]
    x_dis = jnp.tanh(x_dis @ params["dis_dw"] + params["dis_db"])
    x_dis = x_dis @ params["dis_ow"] + params["dis_ob"]
    return x_cls, x_dis


def _reference_matched(features, dis_locations, params):
    """Same precision scheme as the kernel: bf16 matmul operands, f32 accumulate/epilogue."""
    def branch(x, dw, db, ow, ob):
        h = jnp.dot(x.astype(jnp.bfloat16), dw.astype(jnp.bfloat16),
                    preferred_element_type=jnp.float32) + db
        h = jnp.tanh(h)
        return jnp.dot(h.astype(jnp.bfloat16), ow.astype(jnp.bfloat16),
                       preferred_element_type=jnp.float32) + ob
    x_cls = features[:, 0, :]
    x_dis = features[jnp.arange(features.shape[0]), dis_locations, :]
    return (branch(x_cls, params["cls_dw"], params["cls_db"],
                   params["cls_ow"], params["cls_ob"]),
            branch(x_dis, params["dis_dw"], params["dis_db"],
                   params["dis_ow"], params["dis_ob"]))


if __name__ == "__main__":
    B, S, H, L = 2, 8, 32, 2  # batch, seq, hidden_size, num_labels

    key = jax.random.PRNGKey(0)
    k_feat, k_loc, k_param = jax.random.split(key, 3)

    features = jax.random.normal(k_feat, (B, S, H), jnp.float32)
    dis_locations = jax.random.randint(k_loc, (B,), 1, S, dtype=jnp.int32)
    params = init_params(k_param, H, L)
    prepared = prepare_params(params, L)

    cls_logits, dis_logits = roberta_classification_head(features, dis_locations, prepared)
    cls_logits = jax.block_until_ready(cls_logits)
    dis_logits = jax.block_until_ready(dis_logits)

    assert cls_logits.shape == (B, L) and dis_logits.shape == (B, L)

    # Tight check against a precision-matched reference (bf16 operands, f32 accumulate).
    ref_cls_m, ref_dis_m = _reference_matched(features, dis_locations, params)
    assert jnp.allclose(cls_logits, ref_cls_m, atol=2e-3, rtol=2e-3)
    assert jnp.allclose(dis_logits, ref_dis_m, atol=2e-3, rtol=2e-3)

    # Loose sanity check against the pure-f32 reference (bf16 weight storage error only).
    ref_cls, ref_dis = _reference_f32(features, dis_locations, params)
    assert jnp.allclose(cls_logits, ref_cls, atol=2e-2, rtol=2e-2)
    assert jnp.allclose(dis_logits, ref_dis, atol=2e-2, rtol=2e-2)

    print("KERNEL_OK")
</pallas_src>

<mosaic_0001>
module attributes {stable_mosaic.version = 11 : i64} {
  func.func @_head_kernel(%arg0: i32, %arg1: i32, %arg2: memref<1x8x32xf32, #tpu.memory_space<vmem>>, %arg3: memref<1x32x32xbf16, #tpu.memory_space<vmem>>, %arg4: memref<1x1x32xf32, #tpu.memory_space<vmem>>, %arg5: memref<1x32x128xbf16, #tpu.memory_space<vmem>>, %arg6: memref<1x1x128xf32, #tpu.memory_space<vmem>>, %arg7: memref<1x8x128xf32, #tpu.memory_space<vmem>>, %arg8: memref<8x32xf32, #tpu.memory_space<vmem>>) attributes {dimension_semantics = [#tpu.dimension_semantics<parallel>, #tpu.dimension_semantics<arbitrary>], iteration_bounds = array<i64: 2, 1>, scalar_prefetch = 0 : i64, scratch_operands = 1 : i64, tpu.core_type = #tpu.core_type<tc>, window_params = [{transform_indices = @transform_0, window_bounds = array<i64: 1, 8, 32>}, {transform_indices = @transform_1, window_bounds = array<i64: 1, 32, 32>}, {transform_indices = @transform_2, window_bounds = array<i64: 1, 1, 32>}, {transform_indices = @transform_3, window_bounds = array<i64: 1, 32, 128>}, {transform_indices = @transform_4, window_bounds = array<i64: 1, 1, 128>}, {transform_indices = @transform_5, window_bounds = array<i64: 1, 8, 128>}]} {
    %c0_i32 = arith.constant 0 : i32
    %0 = arith.cmpi eq, %arg1, %c0_i32 : i32
    %1 = arith.extui %0 : i1 to i32
    %c0_i32_0 = arith.constant 0 : i32
    %2 = arith.cmpi ne, %1, %c0_i32_0 : i32
    scf.if %2 {
      %cst_12 = arith.constant 0.000000e+00 : f32
      %15 = vector.broadcast %cst_12 : f32 to vector<8x32xf32>
      %c0_13 = arith.constant 0 : index
      %c0_14 = arith.constant 0 : index
      %16 = vector.load %arg8[%c0_13, %c0_14] : memref<8x32xf32, #tpu.memory_space<vmem>>, vector<8x32xf32>
      tpu.vector_store %arg8[%c0_13, %c0_14], %15 {strides = array<i32>} : memref<8x32xf32, #tpu.memory_space<vmem>>, vector<8x32xf32>,
    } else {
    }
    %c0 = arith.constant 0 : index
    %c0_1 = arith.constant 0 : index
    %3 = vector.load %arg8[%c0, %c0_1] : memref<8x32xf32, #tpu.memory_space<vmem>>, vector<8x32xf32>
    %c0_2 = arith.constant 0 : index
    %c0_3 = arith.constant 0 : index
    %c0_4 = arith.constant 0 : index
    %4 = vector.load %arg2[%c0_2, %c0_3, %c0_4] : memref<1x8x32xf32, #tpu.memory_space<vmem>>, vector<1x8x32xf32>
    %5 = vector.shape_cast %4 : vector<1x8x32xf32> to vector<8x32xf32>
    %6 = arith.truncf %5 : vector<8x32xf32> to vector<8x32xbf16>
    %c0_5 = arith.constant 0 : index
    %c0_6 = arith.constant 0 : index
    %c0_7 = arith.constant 0 : index
    %7 = vector.load %arg3[%c0_5, %c0_6, %c0_7] : memref<1x32x32xbf16, #tpu.memory_space<vmem>>, vector<1x32x32xbf16>
    %8 = vector.shape_cast %7 : vector<1x32x32xbf16> to vector<32x32xbf16>
    %cst = arith.constant dense<0.000000e+00> : vector<8x32xf32>
    %9 = tpu.matmul %6, %8, %cst {dimension_numbers = #tpu.dot_dimension_numbers<[1], [0], [0], [1], [0, 0, 1, 1], [], []>} : vector<8x32xbf16>, vector<32x32xbf16>, vector<8x32xf32> -> vector<8x32xf32>
    %10 = arith.addf %3, %9 : vector<8x32xf32>
    %c0_8 = arith.constant 0 : index
    %c0_9 = arith.constant 0 : index
    %11 = vector.load %arg8[%c0_8, %c0_9] : memref<8x32xf32, #tpu.memory_space<vmem>>, vector<8x32xf32>
    tpu.vector_store %arg8[%c0_8, %c0_9], %10 {strides = array<i32>} : memref<8x32xf32, #tpu.memory_space<vmem>>, vector<8x32xf32>,
    %c0_i32_10 = arith.constant 0 : i32
    %12 = arith.cmpi eq, %arg1, %c0_i32_10 : i32
    %13 = arith.extui %12 : i1 to i32
    %c0_i32_11 = arith.constant 0 : i32
    %14 = arith.cmpi ne, %13, %c0_i32_11 : i32
    scf.if %14 {
      %c0_12 = arith.constant 0 : index
      %c0_13 = arith.constant 0 : index
      %15 = vector.load %arg8[%c0_12, %c0_13] : memref<8x32xf32, #tpu.memory_space<vmem>>, vector<8x32xf32>
      %c0_14 = arith.constant 0 : index
      %c0_15 = arith.constant 0 : index
      %c0_16 = arith.constant 0 : index
      %16 = vector.load %arg4[%c0_14, %c0_15, %c0_16] : memref<1x1x32xf32, #tpu.memory_space<vmem>>, vector<1x1x32xf32>
      %17 = vector.shape_cast %16 : vector<1x1x32xf32> to vector<1x32xf32>
      %18 = vector.broadcast %17 : vector<1x32xf32> to vector<8x32xf32>
      %19 = arith.addf %15, %18 : vector<8x32xf32>
      %20 = math.tanh %19 : vector<8x32xf32>
      %21 = arith.truncf %20 : vector<8x32xf32> to vector<8x32xbf16>
      %c0_17 = arith.constant 0 : index
      %c0_18 = arith.constant 0 : index
      %c0_19 = arith.constant 0 : index
      %22 = vector.load %arg5[%c0_17, %c0_18, %c0_19] : memref<1x32x128xbf16, #tpu.memory_space<vmem>>, vector<1x32x128xbf16>
      %23 = vector.shape_cast %22 : vector<1x32x128xbf16> to vector<32x128xbf16>
      %cst_20 = arith.constant dense<0.000000e+00> : vector<8x128xf32>
      %24 = tpu.matmul %21, %23, %cst_20 {dimension_numbers = #tpu.dot_dimension_numbers<[1], [0], [0], [1], [0, 0, 1, 1], [], []>} : vector<8x32xbf16>, vector<32x128xbf16>, vector<8x128xf32> -> vector<8x128xf32>
      %c0_21 = arith.constant 0 : index
      %c0_22 = arith.constant 0 : index
      %c0_23 = arith.constant 0 : index
      %25 = vector.load %arg6[%c0_21, %c0_22, %c0_23] : memref<1x1x128xf32, #tpu.memory_space<vmem>>, vector<1x1x128xf32>
      %26 = vector.shape_cast %25 : vector<1x1x128xf32> to vector<1x128xf32>
      %27 = vector.broadcast %26 : vector<1x128xf32> to vector<8x128xf32>
      %28 = arith.addf %24, %27 : vector<8x128xf32>
      %c0_24 = arith.constant 0 : index
      %c0_25 = arith.constant 0 : index
      %c0_26 = arith.constant 0 : index
      %29 = vector.load %arg7[%c0_24, %c0_25, %c0_26] : memref<1x8x128xf32, #tpu.memory_space<vmem>>, vector<1x8x128xf32>
      %30 = vector.shape_cast %29 : vector<1x8x128xf32> to vector<8x128xf32>
      %31 = vector.shape_cast %28 : vector<8x128xf32> to vector<1x8x128xf32>
      tpu.vector_store %arg7[%c0_24, %c0_25, %c0_26], %31 {strides = array<i32>} : memref<1x8x128xf32, #tpu.memory_space<vmem>>, vector<1x8x128xf32>,
    } else {
    }
    return
  }
  func.func @transform_0(%arg0: i32, %arg1: i32) -> (i32, i32, i32) {
    %c0_i32 = arith.constant 0 : i32
    %c0_i32_0 = arith.constant 0 : i32
    return %arg0, %c0_i32, %arg1 : i32, i32, i32
  }
  func.func @transform_1(%arg0: i32, %arg1: i32) -> (i32, i32, i32) {
    %c0_i32 = arith.constant 0 : i32
    %c0_i32_0 = arith.constant 0 : i32
    return %arg0, %arg1, %c0_i32 : i32, i32, i32
  }
  func.func @transform_2(%arg0: i32, %arg1: i32) -> (i32, i32, i32) {
    %c0_i32 = arith.constant 0 : i32
    %c0_i32_0 = arith.constant 0 : i32
    %c0_i32_1 = arith.constant 0 : i32
    return %arg0, %c0_i32, %c0_i32_0 : i32, i32, i32
  }
  func.func @transform_3(%arg0: i32, %arg1: i32) -> (i32, i32, i32) {
    %c0_i32 = arith.constant 0 : i32
    %c0_i32_0 = arith.constant 0 : i32
    %c0_i32_1 = arith.constant 0 : i32
    return %arg0, %c0_i32, %c0_i32_0 : i32, i32, i32
  }
  func.func @transform_4(%arg0: i32, %arg1: i32) -> (i32, i32, i32) {
    %c0_i32 = arith.constant 0 : i32
    %c0_i32_0 = arith.constant 0 : i32
    %c0_i32_1 = arith.constant 0 : i32
    return %arg0, %c0_i32, %c0_i32_0 : i32, i32, i32
  }
  func.func @transform_5(%arg0: i32, %arg1: i32) -> (i32, i32, i32) {
    %c0_i32 = arith.constant 0 : i32
    %c0_i32_0 = arith.constant 0 : i32
    %c0_i32_1 = arith.constant 0 : i32
    return %arg0, %c0_i32, %c0_i32_0 : i32, i32, i32
  }
}

</mosaic_0001>

<bundles_post_ra>
// kernel: tpu_custom_call.1
= control target key start
LH: loop header
LB: loop body
LE: loop exit
PB: predicated region body
PF: predicated region fallthrough
CT: control target
= control target key end

     0   :  { %s1228_s0 = inlined_call_operand.hbm [shape: f32[2,8,32], index: 0, kind: input, shape index: {}]   ;;  %s1229_s1 = inlined_call_operand.hbm [shape: bf16[2,32,32], index: 1, kind: input, shape index: {}]   ;;  %s1230_s2 = inlined_call_operand.hbm [shape: f32[2,1,32], index: 2, kind: input, shape index: {}]   ;;  %s1231_s3 = inlined_call_operand.hbm [shape: bf16[2,32,128], index: 3, kind: input, shape index: {}]   ;;  %s1232_s4 = inlined_call_operand.vmem [shape: f32[2,1,128], index: 4, kind: input, shape index: {}]   ;;  %s1233_s5 = inlined_call_operand.hbm [shape: f32[2,8,128], index: 5, kind: output, shape index: {}]  }
   0x1   :  { %1243 = sst [smem:[#allocation21_spill]] %s1228_s0 }
   0x2   :  { %1244 = sst [smem:[#allocation22_spill]] %s1229_s1 }
   0x3   :  { %10 = vsyncpa [#allocation4], 0 }
   0x4   :  { %12 = vsyncpa [#allocation4 + $0x1], 0 }
   0x5   :  { %13 = vsyncpa [#allocation7], 0 }
   0x6   :  { %15 = vsyncpa [#allocation7 + $0x1], 0 }
   0x7   :  { %16 = vsyncpa [#allocation10], 0 }
   0x8   :  { %18 = vsyncpa [#allocation10 + $0x1], 0 }
   0x9   :  { %19 = vsyncpa [#allocation5], 0 }
   0xa   :  { %21 = vsyncpa [#allocation5 + $0x1], 0  ;;  %s1028_s18 = smov 0   ;;  %s1030_s19 = smov 0  }
   0xb   :  { %s1032_s20 = smov 0   ;;  %s1034_s21 = smov 0  }
   0xc   :  { %s1036_s22 = smov 0   ;;  %s1038_s23 = smov 0  }
   0xd LB: > { %1245 = sst [smem:[#allocation16_spill]] %s981_s20  ;;  %s1059_s24 = sadd.s32 4294967295, %s993_s23   ;;  %s993_s23 = sphi %s1038_s23, %s27_s23   ;;  %s989_s22 = sphi %s1036_s22, %s1270_s22   ;;  %s985_s21 = sphi %s1034_s21, %s1269_s21   ;;  %s981_s20 = sphi %s1032_s20, %s1265_s20   ;;  %s977_s19 = sphi %s1030_s19, %s1268_s19   ;;  %s973_s18 = sphi %s1028_s18, %s1267_s18  }
   0xe   : > { %1246 = sst [smem:[#allocation17_spill]] %s993_s23  ;;  %s655_s25 = sadd.s32 4294967294, %s993_s23  }
   0xf   : > { %s39_s26 = sadd.s32 1, %s989_s22  ;;  %s48_s27 = sadd.s32 1, %s981_s20 }
  0x10   : > { %p41_p0 = scmp.ge.s32.totalorder %s39_s26, 2  ;;  %p55_p1 = scmp.ne.s32.totalorder %s981_s20, %s977_s19 }
  0x11   : > { %p56_p2 = scmp.eq.s32.totalorder %s993_s23, 0  ;;  %p61_p3 = scmp.ne.s32.totalorder %s977_s19, %s973_s18 }
  0x12   : > { %s1272_s26 = smov (%p41_p0, %s39_s26), 0  ;;  %p62_p5 = scmp.eq.s32.totalorder %s1059_s24, 0 }
  0x13   : > { %1247 = sst [smem:[#allocation18_spill]] %s1272_s26  ;;  %p1071_p4 = por %p56_p2, %p55_p1 }
  0x14   : > { %s43_s29 = ssub.s32 %s989_s22, %s1272_s26  ;;  %p191_p6 = scmp.eq.s32.totalorder %s1059_s24, 1 }
  0x15   : > { %p46_p7 = scmp.eq.s32.totalorder %s43_s29, 0  ;;  %p1079_p8 = por %p62_p5, %p61_p3 }
  0x16   : > { %p1083_p9 = por %p191_p6, %p55_p1  ;;  %p197_p10 = scmp.eq.s32.totalorder %s655_s25, 1 }
  0x17   : > { %s1088_s7 = scalar_select %p46_p7, %s981_s20, %s48_s27  }
  0x18   : > { %p1090_p11 = por %p197_p10, %p61_p3  ;;  %p657_p12 = scmp.ge.s32.totalorder %s993_s23, 2 }
  0x19   : > { %1251 = sst [smem:[#allocation19_spill]] %s1088_s7  ;;  %p726_p13 = scmp.lt.s32.totalorder %s993_s23, 2 }
  0x1a   : > { %s1252_s8 = scalar_select %p1090_p11, 1, 0 }
  0x1b   : > { %s1097_s9 = sand.u32 1, %s981_s20   ;;  %s237_s10 = sand.u32 1, %s993_s23  }
  0x1c   : > { %1253 = sst [smem:[#allocation20_spill]] %s1252_s8  ;;  %s1235_s11 = sshll.u32 %s1097_s9, 4 }
  0x1d   : > { %p1103_p0 = pnand %p726_p13, %p1071_p4  ;;  %s1236_s13 = sshll.u32 %s989_s22, 4 }
  0x1e   : > { %s1255_s1 = sld [smem:[#allocation22_spill]]  ;;  %s241_s25 = scalar_lea.vmem [#allocation6], %s1235_s11 }
  0x1f   : > { %s251_s27 = sshll.u32 %s241_s25, 4  ;;  %s238_s28 = scalar_lea.sflag [#allocation7], %s237_s10  ;;  %s252_s27 = int_to_ptr.vmem [resolvable:$true] %s251_s27 }
  0x20   : > { %s1237_s29 = smov 64   ;;  %s1238_s26 = smov 4  }
  0x21   : > { %p666_p1 = scmp.ge.s32.totalorder %s993_s23, 1  ;;  %p304_p2 = scmp.lt.s32.totalorder %s993_s23, 3 }
  0x22   : > { %s658_s15 = sshll.u32 %s1097_s9, 3  ;;  %s1257_s0 = sld [smem:[#allocation21_spill]] }
  0x23   : > { %p1122_p3 = pnand %p666_p1, %p304_p2  ;;  %s264_s23 = scalar_lea.vmem [#allocation8], %s1097_s9 }
  0x24   : > { %s248_s16 = scalar_lea.hbm %s1255_s1, %s1236_s13  ;;  %s221_s1 = scalar_lea.vmem [#allocation3], %s658_s15 }
  0x25   : > { %s249_s17 = sshll.u32 %s248_s16, 4  ;;  %s659_s16 = sshll.u32 %s989_s22, 3  ;;  %s250_s17 = int_to_ptr.hbm [resolvable:$true] %s249_s17 }
  0x26   : > { %715 = dma.hbm_to_vmem [thread:$0]  (!%p1103_p0), %s250_s17, 256, %s252_s27, %s238_s28, %s1237_s29, %s1237_s29, %s1238_s26  }
  0x27   : > { %s230_s7 = sshll.u32 %s221_s1, 4  ;;  %s218_s17 = scalar_lea.sflag [#allocation4], %s1097_s9  ;;  %s231_s7 = int_to_ptr.vmem [resolvable:$true] %s230_s7 }
  0x28   : > { %s226_s11 = scalar_lea.hbm %s1257_s0, %s659_s16  ;;  %s267_s26 = scalar_lea.hbm %s1230_s2, %s989_s22 }
  0x29   : > { %s228_s13 = sshll.u32 %s226_s11, 4  ;;  %s269_s20 = sshll.u32 %s267_s26, 4  ;;  %s229_s13 = int_to_ptr.hbm [resolvable:$true] %s228_s13  ;;  %s270_s20 = int_to_ptr.hbm [resolvable:$true] %s269_s20 }
  0x2a   : > { %712 = dma.hbm_to_vmem [thread:$0]  (!%p1103_p0), %s229_s13, 128, %s231_s7, %s218_s17  }
  0x2b   : > { %s271_s10 = sshll.u32 %s264_s23, 4  ;;  %s1258_s11 = sshll.u32 %s989_s22, 4  ;;  %s272_s10 = int_to_ptr.vmem [resolvable:$true] %s271_s10 }
  0x2c   : > { %718 = dma.hbm_to_vmem [thread:$0]  (!%p1103_p0), %s270_s20, 16, %s272_s10, %s238_s28  }
  0x2d   : > { %s287_s16 = scalar_lea.hbm %s1231_s3, %s1258_s11  ;;  %s1259_s25 = sshll.u32 %s1097_s9, 4 }
  0x2e   : > { %s282_s0 = scalar_lea.vmem [#allocation9], %s1259_s25  ;;  %s288_s7 = sshll.u32 %s287_s16, 4  ;;  %s289_s7 = int_to_ptr.hbm [resolvable:$true] %s288_s7 }
  0x2f   : > { %s290_s8 = sshll.u32 %s282_s0, 4  ;;  %s279_s13 = scalar_lea.sflag [#allocation10], %s1097_s9  ;;  %s291_s8 = int_to_ptr.vmem [resolvable:$true] %s290_s8 }
  0x30   : > { %s1260_s26 = smov 4   ;;  %s1261_s29 = smov 64  }
  0x31   : > { %721 = dma.hbm_to_vmem [thread:$0]  (!%p1103_p0), %s289_s7, 256, %s291_s8, %s279_s13, %s1261_s29, %s1261_s29, %s1260_s26  }
  0x32   : > { %308 = sbr.rel (%p1122_p3) target bundleno = 351 (0x15f), region = 40  ;;  %s1157_s20 = sand.u32 (!%p1122_p3), 1, %s977_s19  }
  0x33   : > { %s667_s0 = sshll.u32 (!%p1122_p3), %s1157_s20, 3  ;;  %s311_s23 = scalar_lea.sflag (!%p1122_p3), [#allocation4], %s1157_s20 }
  0x34   : > { %s314_s28 = scalar_lea.vmem (!%p1122_p3), [#allocation3], %s667_s0 }
  0x37   : > { %956 = dma.done.wait (%p1079_p8), %s311_s23, 128  }
  0x38   : > { %958 = vsyncadd (%p1079_p8), %s311_s23, 4294967168  ;;  %s320_s8 = sand.u32 1, %s1059_s24   ;;  %s668_s9 = sshll.u32 %s1157_s20, 4 }
  0x39   : > { %s321_s12 = scalar_lea.sflag [#allocation7], %s320_s8  ;;  %s324_s14 = scalar_lea.vmem [#allocation6], %s668_s9 }
  0x3a   : > { %960 = dma.done.wait (%p1079_p8), %s321_s12, 272  }
  0x3b   : > { %962 = vsyncadd (%p1079_p8), %s321_s12, 4294967024  ;;  %s333_s17 = scalar_lea.vmem [#allocation8], %s1157_s20  ;;  %s340_s27 = scalar_lea.sflag [#allocation10], %s1157_s20 }
  0x3c   : > { %s343_s10 = scalar_lea.vmem [#allocation9], %s668_s9 }
  0x3d   : > { %964 = dma.done.wait (%p1079_p8), %s340_s27, 256  }
  0x3e   : > { %966 = vsyncadd (%p1079_p8), %s340_s27, 4294967040  ;;  %vm397_vm0 = vcmask 261120   ;;  %v997_v0 = vmov 0.0   ;;  %v696_v1 = vld [vmem:[%s324_s14 + $0x8] sm:$0xff]  ;;  %v695_v2 = vld [vmem:[%s324_s14] sm:$0xff]  ;;  %p389_p4 = scmp.lt.s32.totalorder %s985_s21, 1 }
  0x3f   : > { %398 = vst.msk [vmem:[#allocation2] sm:$0xff] %vm397_vm0, %v997_v0  ;;  %428 = vmatpush.bf16.msra.mxu0 %v696_v1  ;;  %v400_v3 = vld [vmem:[%s314_s28] sm:$0xff]  ;;  %v779_v10 = vld [vmem:[%s333_s17] ss:$0 sm:$0xff]  ;;  %s690_s15 = sshll.u32 %s985_s21, 3  ;;  %s387_s13 = scalar_lea.vmem [#allocation11], %s667_s0 }
  0x40   : > { %v401_v4 = vpack.c.bf16 %v400_v3, %v400_v3  ;;  %s390_s24 = scalar_select %p389_p4, %s985_s21, 1  ;;  %v698_v5 = vld [vmem:[%s343_s10 + $0x8] sm:$0xff]  ;;  %v697_v6 = vld [vmem:[%s343_s10] sm:$0xff] }
  0x41   : > { %477 = vmatpush.bf16.msra.mxu1 %v698_v5  ;;  %s496_s7 = scalar_lea.hbm %s1233_s5, %s690_s15  ;;  %s498_s26 = sshll.u32 %s387_s13, 4  ;;  %s499_s26 = int_to_ptr.vmem [resolvable:$true] %s498_s26 }
  0x42   : > { %s391_s30 = scalar_lea.vmem %s1232_s4, %s390_s24  ;;  %s500_s29 = sshll.u32 %s496_s7, 4  ;;  %s501_s29 = int_to_ptr.hbm [resolvable:$true] %s500_s29 }
  0x43   : > { %429 = vmatpush.bf16.msra.mxu0 %v695_v2  ;;  %v780_v16 = vld [vmem:[%s391_s30] ss:$0 sm:$0xff]  ;;  %s486_s23 = scalar_lea.sflag [#allocation5], %s1157_s20  ;;  %s917_s28 = sshra.s32 %s501_s29, 4  ;;  %s918_s28 = int_to_ptr.hbm [resolvable:$true] %s917_s28 }
  0x44   : > { %s919_s8 = scalar_lea.hbm %s918_s28, 8  ;;  %s923_s12 = scalar_lea.hbm %s1233_s5, 16 }
  0x45   : > { %478 = vmatpush.bf16.msra.mxu1 %v697_v6  ;;  %p920_p5 = scmp.ne.s32.totalorder %s918_s28, %s919_s8  ;;  %p924_p8 = scmp.lt.s32.totalorder %s918_s28, %s1233_s5 }
  0x46   : > { %679 = vmatmul.msk.bf16.vlgmr.msra.gmra.mxu0 %vm397_vm0, %v401_v4  ;;  %v399_v7 = vld [vmem:[#allocation2] sm:$0xff]  ;;  %p925_p10 = scmp.lt.s32.totalorder %s923_s12, %s919_s8 }
  0x47   : > { %p921_p6 = pnand %p920_p5, %p1083_p9 }
  0x48   : > { %p926_p13 = por %p925_p10, %p924_p8 }
  0x49   : > { %p922_p7 = pneg %p921_p6 }
  0x4b   : > { %p927_p0 = pnand %p926_p13, %p922_p7 }
  0xc3   : > { %v431_v8 = vpop.f32.mrf.mxu0 }
  0xc4   : > { %v435_v9 = vadd.f32 %v431_v8, %v399_v7 }
  0xc6   : > { %436 = vst.msk [vmem:[#allocation2] sm:$0xff] %vm397_vm0, %v435_v9 }
  0xcb   : > { %v433_v11 = vpop.f32.mrf.mxu0 }
  0xcd   : > { %v440_v12 = vld [vmem:[#allocation2] sm:$0xff] }
  0xce   : > { %v445_v13 = vadd.f32 %v779_v10, %v440_v12 }
  0xd0   : > { %781 = vtanh.f32 %v445_v13 }
  0xd6   : > { %v782_v14 = vpop.eup %781 }
  0xd7   : > { %v447_v15 = vpack.c.bf16 %v782_v14, %v782_v14 }
  0xd9   : > { %688 = vmatmul.msk.bf16.vlgmr.msra.gmra.mxu1 %vm397_vm0, %v447_v15 }
 0x156   : > { %v480_v17 = vpop.f32.mrf.mxu1 }
 0x157   : > { %v481_v18 = vadd.f32 %v780_v16, %v480_v17 }
 0x159   : > { %484 = vst [vmem:[%s387_s13] sm:$0xff] %v481_v18 }
 0x15a   : > { %930 = shalt.err (!%p927_p0)
}
 0x15b   : > { %707 = dma.vmem_to_hbm [thread:$0]  (%p1083_p9), %s499_s26, 128, %s501_s29, %s486_s23  }
 0x15e   : > { %v482_v19 = vpop.f32.mrf.mxu1 }
 0x15f PF: > { %s1263_s17 = sld [smem:[#allocation17_spill]]  ;;  %s512_s27 = sand.u32 1, %s973_s18  }
 0x160   : > { %p723_p1 = pnand %p657_p12, %p1090_p11  ;;  %s513_s10 = scalar_lea.sflag [#allocation5], %s512_s27 }
 0x162   : > { %p724_p2 = pneg %p723_p1 }
 0x164   : > { %968 = dma.done.wait (%p724_p2), %s513_s10, 128  }
 0x165   : > { %970 = vsyncadd (%p724_p2), %s513_s10, 4294967168  ;;  %s27_s23 = sadd.s32 1, %s1263_s17   ;;  %s1264_s24 = sld [smem:[#allocation16_spill]] }
 0x166   : > { %p24_p3 = scmp.ge.s32.totalorder %s27_s23, 4   ;;  %s1265_s20 = sld [smem:[#allocation19_spill]] }
 0x167   : > { %s1266_s6 = sld [smem:[#allocation18_spill]]  ;;  %s1267_s18 = smov %s977_s19 }
 0x168   : > { %s1269_s21 = smov %s989_s22 }
 0x169   :  { %26 = sbr.rel (!%p24_p3) target bundleno = 13 (0xd), region = 133 }
 0x16b   : > { %s1268_s19 = smov %s1264_s24 }
 0x16d   : > { %s1270_s22 = smov %s1266_s6 }
 0x16e   :  { %519 = vsyncpa [#allocation4], 1 }
 0x16f   :  { %521 = vsyncpa [#allocation4 + $0x1], 1 }
 0x170   :  { %522 = vsyncpa [#allocation7], 1 }
 0x171   :  { %524 = vsyncpa [#allocation7 + $0x1], 1 }
 0x172   :  { %525 = vsyncpa [#allocation10], 1 }
 0x173   :  { %527 = vsyncpa [#allocation10 + $0x1], 1 }
 0x174   :  { %528 = vsyncpa [#allocation5], 1 }
 0x175   :  { %530 = vsyncpa [#allocation5 + $0x1], 1 }

</bundles_post_ra>
